<compile_context>
chip_gen: v6e
topology: v6e:2x2x1
jax: 0.10.0
libtpu: 0.0.40
codegen_flags: <defaults>
</compile_context>

<pallas_src>
import jax
import jax.numpy as jnp
from jax.experimental import pallas as pl
from jax.experimental.pallas import tpu as pltpu

_LANE = 128


def _round_up(x, m):
    return ((x + m - 1) // m) * m


def _mlp_kernel(x_ref, w1_ref, b1_ref, w2_ref, b2_ref, w3_ref, b3_ref, o_ref):
    # One batch tile per grid step: three MXU matmuls with f32 accumulation,
    # bias-add + ReLU in f32 on the VPU (fast path on all generations).
    x = x_ref[...]
    h1 = jnp.dot(x, w1_ref[...], preferred_element_type=jnp.float32) + b1_ref[...]
    h1 = jnp.maximum(h1, 0.0).astype(w2_ref.dtype)
    h2 = jnp.dot(h1, w2_ref[...], preferred_element_type=jnp.float32) + b2_ref[...]
    h2 = jnp.maximum(h2, 0.0).astype(w3_ref.dtype)
    out = jnp.dot(h2, w3_ref[...], preferred_element_type=jnp.float32) + b3_ref[...]
    o_ref[...] = out.astype(o_ref.dtype)  # narrow (tb, out_size) store; cheap


def prepare_params(params, *, use_bf16=False):
    """One-time weight preparation, hoisted out of the per-call hot path.

    Casts weight matrices to bf16 if requested (halves read DMA on v6e/v7x and
    is the native MXU path on v7x).  Biases stay f32 so bias-add / ReLU stay in
    f32 on the VPU (v5e has no bf16 VPU).
    """
    p = dict(params)
    if use_bf16:
        for k in ("w1", "w2", "w3"):
            p[k] = p[k].astype(jnp.bfloat16)
    return p


def crash_severity_net(x, params, *, tile_b=1024, out_dtype=jnp.float32):
    """3-layer MLP forward pass as a batch-tiled Pallas kernel.

    x:       (B, input_size) float32
    params:  dict with w1 (in,h), b1 (1,h), w2 (h,h), b2 (1,h),
             w3 (h,out), b3 (1,out) -- transposed to (in, out); weights may be
             bf16 (see prepare_params), biases f32.
    returns: (B, output_size) logits in out_dtype.
    """
    B, in_size = x.shape
    hidden = params["w1"].shape[1]
    out_size = params["w3"].shape[1]

    compute_dtype = params["w1"].dtype
    # bf16 packs 16 rows per sublane group; f32 packs 8.
    sub_mult = 16 if compute_dtype == jnp.dtype(jnp.bfloat16) else 8

    # --- batch tile: near-even split (small pad), even #tiles for 2-TC chips.
    n_tiles = max(1, pl.cdiv(B, max(tile_b, sub_mult)))
    if n_tiles > 1 and n_tiles % 2 == 1:
        n_tiles += 1  # balanced across the 2 TensorCores on v7x; harmless elsewhere
    tb = _round_up(pl.cdiv(B, n_tiles), sub_mult)

    # --- conservative VMEM cap: 2x double-buffered in/out tiles (out block is
    # lane-padded to 128 in VMEM even though the HBM array is only 3 wide) must
    # fit comfortably under the 32 MiB scoped default (safe on v7x too).
    bytes_per_row = 2 * (in_size * 4 + _LANE * 4)
    max_tb = max(sub_mult,
                 ((24 * 1024 * 1024) // max(bytes_per_row, 1)) // sub_mult * sub_mult)
    tb = min(tb, max_tb)

    b_pad = _round_up(B, tb)
    n_tiles = b_pad // tb

    x_in = x
    if compute_dtype == jnp.dtype(jnp.bfloat16):
        x_in = x_in.astype(jnp.bfloat16)
    if b_pad != B:
        x_in = jnp.pad(x_in, ((0, b_pad - B), (0, 0)))

    w1, b1 = params["w1"], params["b1"]
    w2, b2 = params["w2"], params["b2"]
    w3, b3 = params["w3"], params["b3"]

    # Weights/biases: constant index_map -> DMA'd once, resident across the grid.
    def resident(arr):
        return pl.BlockSpec(arr.shape, lambda i: (0, 0))

    flops = 2 * b_pad * (in_size * hidden + hidden * hidden + hidden * out_size)
    bytes_accessed = (
        x_in.size * x_in.dtype.itemsize
        + sum(a.size * a.dtype.itemsize for a in (w1, b1, w2, b2, w3, b3))
        + b_pad * out_size * jnp.dtype(out_dtype).itemsize
    )

    out = pl.pallas_call(
        _mlp_kernel,
        out_shape=jax.ShapeDtypeStruct((b_pad, out_size), out_dtype),
        grid=(n_tiles,),
        in_specs=[
            pl.BlockSpec((tb, in_size), lambda i: (i, 0)),   # streamed activations
            resident(w1), resident(b1),
            resident(w2), resident(b2),
            resident(w3), resident(b3),
        ],
        out_specs=pl.BlockSpec((tb, out_size), lambda i: (i, 0)),
        compiler_params=pltpu.CompilerParams(
            dimension_semantics=("parallel",),   # megacore sharding on v7x
        ),
        cost_estimate=pl.CostEstimate(
            flops=flops, transcendentals=0, bytes_accessed=bytes_accessed),
    )(x_in, w1, b1, w2, b2, w3, b3)

    return out[:B]


def init_params(key, input_size, hidden_size, output_size=3):
    """Deterministic synthetic init (torch-style uniform(-1/sqrt(fan_in), ..))."""
    ks = jax.random.split(key, 6)

    def linear(kw, kb, fan_in, fan_out):
        bound = 1.0 / jnp.sqrt(jnp.float32(fan_in))
        # torch weight is (out, in); store transposed as (in, out) for x @ W.
        w_t = jax.random.uniform(kw, (fan_out, fan_in), jnp.float32, -bound, bound).T
        b = jax.random.uniform(kb, (1, fan_out), jnp.float32, -bound, bound)
        return w_t, b

    w1, b1 = linear(ks[0], ks[1], input_size, hidden_size)
    w2, b2 = linear(ks[2], ks[3], hidden_size, hidden_size)
    w3, b3 = linear(ks[4], ks[5], hidden_size, output_size)
    return {"w1": w1, "b1": b1, "w2": w2, "b2": b2, "w3": w3, "b3": b3}


def _reference(x, p):
    h1 = jnp.maximum(x @ p["w1"] + p["b1"], 0.0)
    h2 = jnp.maximum(h1 @ p["w2"] + p["b2"], 0.0)
    return h2 @ p["w3"] + p["b3"]


if __name__ == "__main__":
    key = jax.random.PRNGKey(0)
    k_x, k_p, k_x2 = jax.random.split(key, 3)

    batch = 8
    input_size = 16
    hidden_size = 32
    output_size = 3

    x = jax.random.normal(k_x, (batch, input_size), dtype=jnp.float32)
    params = init_params(k_p, input_size, hidden_size, output_size)

    # f32 path: strict check against the pure-JAX reference.
    out = jax.block_until_ready(crash_severity_net(x, params))
    ref = _reference(x, params)
    assert out.shape == (batch, output_size)
    assert jnp.allclose(out, ref, atol=1e-5, rtol=1e-5)

    # Ragged batch + multiple grid tiles (exercises near-even split + pipeline).
    x2 = jax.random.normal(k_x2, (100, input_size), dtype=jnp.float32)
    out2 = jax.block_until_ready(crash_severity_net(x2, params, tile_b=32))
    ref2 = _reference(x2, params)
    assert out2.shape == (100, output_size)
    assert jnp.allclose(out2, ref2, atol=1e-5, rtol=1e-5)

    # bf16 MXU operands (f32 accumulation, f32 biases): prepared once, reused.
    params_bf16 = prepare_params(params, use_bf16=True)
    out_bf16 = jax.block_until_ready(crash_severity_net(x, params_bf16))
    assert out_bf16.shape == (batch, output_size)
    assert jnp.allclose(out_bf16, ref, atol=1e-1, rtol=1e-1)

    print("KERNEL_OK")
</pallas_src>

<mosaic_0001>
module attributes {stable_mosaic.version = 11 : i64} {
  func.func @_mlp_kernel(%arg0: i32, %arg1: memref<8x16xf32, #tpu.memory_space<vmem>>, %arg2: memref<16x32xf32, #tpu.memory_space<vmem>>, %arg3: memref<1x32xf32, #tpu.memory_space<vmem>>, %arg4: memref<32x32xf32, #tpu.memory_space<vmem>>, %arg5: memref<1x32xf32, #tpu.memory_space<vmem>>, %arg6: memref<32x3xf32, #tpu.memory_space<vmem>>, %arg7: memref<1x3xf32, #tpu.memory_space<vmem>>, %arg8: memref<8x3xf32, #tpu.memory_space<vmem>>) attributes {dimension_semantics = [#tpu.dimension_semantics<parallel>], iteration_bounds = array<i64: 1>, scalar_prefetch = 0 : i64, scratch_operands = 0 : i64, tpu.core_type = #tpu.core_type<tc>, window_params = [{transform_indices = @transform_0, window_bounds = array<i64: 8, 16>}, {pipeline_mode = #tpu.pipeline_mode<synchronous>, transform_indices = @transform_1, window_bounds = array<i64: 16, 32>}, {pipeline_mode = #tpu.pipeline_mode<synchronous>, transform_indices = @transform_2, window_bounds = array<i64: 1, 32>}, {pipeline_mode = #tpu.pipeline_mode<synchronous>, transform_indices = @transform_3, window_bounds = array<i64: 32, 32>}, {pipeline_mode = #tpu.pipeline_mode<synchronous>, transform_indices = @transform_4, window_bounds = array<i64: 1, 32>}, {pipeline_mode = #tpu.pipeline_mode<synchronous>, transform_indices = @transform_5, window_bounds = array<i64: 32, 3>}, {pipeline_mode = #tpu.pipeline_mode<synchronous>, transform_indices = @transform_6, window_bounds = array<i64: 1, 3>}, {transform_indices = @transform_7, window_bounds = array<i64: 8, 3>}]} {
    %c0 = arith.constant 0 : index
    %c0_0 = arith.constant 0 : index
    %0 = vector.load %arg1[%c0, %c0_0] : memref<8x16xf32, #tpu.memory_space<vmem>>, vector<8x16xf32>
    %c0_1 = arith.constant 0 : index
    %c0_2 = arith.constant 0 : index
    %1 = vector.load %arg2[%c0_1, %c0_2] : memref<16x32xf32, #tpu.memory_space<vmem>>, vector<16x32xf32>
    %cst = arith.constant dense<0.000000e+00> : vector<8x32xf32>
    %2 = tpu.matmul %0, %1, %cst {dimension_numbers = #tpu.dot_dimension_numbers<[1], [0], [0], [1], [0, 0, 1, 1], [], []>} : vector<8x16xf32>, vector<16x32xf32>, vector<8x32xf32> -> vector<8x32xf32>
    %c0_3 = arith.constant 0 : index
    %c0_4 = arith.constant 0 : index
    %3 = vector.load %arg3[%c0_3, %c0_4] : memref<1x32xf32, #tpu.memory_space<vmem>>, vector<1x32xf32>
    %4 = vector.broadcast %3 : vector<1x32xf32> to vector<8x32xf32>
    %5 = arith.addf %2, %4 : vector<8x32xf32>
    %cst_5 = arith.constant 0.000000e+00 : f32
    %6 = vector.broadcast %cst_5 : f32 to vector<8x32xf32>
    %7 = arith.maximumf %5, %6 : vector<8x32xf32>
    %c0_6 = arith.constant 0 : index
    %c0_7 = arith.constant 0 : index
    %8 = vector.load %arg4[%c0_6, %c0_7] : memref<32x32xf32, #tpu.memory_space<vmem>>, vector<32x32xf32>
    %cst_8 = arith.constant dense<0.000000e+00> : vector<8x32xf32>
    %9 = tpu.matmul %7, %8, %cst_8 {dimension_numbers = #tpu.dot_dimension_numbers<[1], [0], [0], [1], [0, 0, 1, 1], [], []>} : vector<8x32xf32>, vector<32x32xf32>, vector<8x32xf32> -> vector<8x32xf32>
    %c0_9 = arith.constant 0 : index
    %c0_10 = arith.constant 0 : index
    %10 = vector.load %arg5[%c0_9, %c0_10] : memref<1x32xf32, #tpu.memory_space<vmem>>, vector<1x32xf32>
    %11 = vector.broadcast %10 : vector<1x32xf32> to vector<8x32xf32>
    %12 = arith.addf %9, %11 : vector<8x32xf32>
    %cst_11 = arith.constant 0.000000e+00 : f32
    %13 = vector.broadcast %cst_11 : f32 to vector<8x32xf32>
    %14 = arith.maximumf %12, %13 : vector<8x32xf32>
    %c0_12 = arith.constant 0 : index
    %c0_13 = arith.constant 0 : index
    %15 = vector.load %arg6[%c0_12, %c0_13] : memref<32x3xf32, #tpu.memory_space<vmem>>, vector<32x3xf32>
    %cst_14 = arith.constant dense<0.000000e+00> : vector<8x3xf32>
    %16 = tpu.matmul %14, %15, %cst_14 {dimension_numbers = #tpu.dot_dimension_numbers<[1], [0], [0], [1], [0, 0, 1, 1], [], []>} : vector<8x32xf32>, vector<32x3xf32>, vector<8x3xf32> -> vector<8x3xf32>
    %c0_15 = arith.constant 0 : index
    %c0_16 = arith.constant 0 : index
    %17 = vector.load %arg7[%c0_15, %c0_16] : memref<1x3xf32, #tpu.memory_space<vmem>>, vector<1x3xf32>
    %18 = vector.broadcast %17 : vector<1x3xf32> to vector<8x3xf32>
    %19 = arith.addf %16, %18 : vector<8x3xf32>
    %c0_17 = arith.constant 0 : index
    %c0_18 = arith.constant 0 : index
    %20 = vector.load %arg8[%c0_17, %c0_18] : memref<8x3xf32, #tpu.memory_space<vmem>>, vector<8x3xf32>
    tpu.vector_store %arg8[%c0_17, %c0_18], %19 {strides = array<i32>} : memref<8x3xf32, #tpu.memory_space<vmem>>, vector<8x3xf32>,
    return
  }
  func.func @transform_0(%arg0: i32) -> (i32, i32) {
    %c0_i32 = arith.constant 0 : i32
    %c0_i32_0 = arith.constant 0 : i32
    return %arg0, %c0_i32 : i32, i32
  }
  func.func @transform_1(%arg0: i32) -> (i32, i32) {
    %c0_i32 = arith.constant 0 : i32
    %c0_i32_0 = arith.constant 0 : i32
    %c0_i32_1 = arith.constant 0 : i32
    return %c0_i32, %c0_i32_0 : i32, i32
  }
  func.func @transform_2(%arg0: i32) -> (i32, i32) {
    %c0_i32 = arith.constant 0 : i32
    %c0_i32_0 = arith.constant 0 : i32
    %c0_i32_1 = arith.constant 0 : i32
    return %c0_i32, %c0_i32_0 : i32, i32
  }
  func.func @transform_3(%arg0: i32) -> (i32, i32) {
    %c0_i32 = arith.constant 0 : i32
    %c0_i32_0 = arith.constant 0 : i32
    %c0_i32_1 = arith.constant 0 : i32
    return %c0_i32, %c0_i32_0 : i32, i32
  }
  func.func @transform_4(%arg0: i32) -> (i32, i32) {
    %c0_i32 = arith.constant 0 : i32
    %c0_i32_0 = arith.constant 0 : i32
    %c0_i32_1 = arith.constant 0 : i32
    return %c0_i32, %c0_i32_0 : i32, i32
  }
  func.func @transform_5(%arg0: i32) -> (i32, i32) {
    %c0_i32 = arith.constant 0 : i32
    %c0_i32_0 = arith.constant 0 : i32
    %c0_i32_1 = arith.constant 0 : i32
    return %c0_i32, %c0_i32_0 : i32, i32
  }
  func.func @transform_6(%arg0: i32) -> (i32, i32) {
    %c0_i32 = arith.constant 0 : i32
    %c0_i32_0 = arith.constant 0 : i32
    %c0_i32_1 = arith.constant 0 : i32
    return %c0_i32, %c0_i32_0 : i32, i32
  }
  func.func @transform_7(%arg0: i32) -> (i32, i32) {
    %c0_i32 = arith.constant 0 : i32
    %c0_i32_0 = arith.constant 0 : i32
    return %arg0, %c0_i32 : i32, i32
  }
}

</mosaic_0001>

<bundles_post_ra>
// kernel: tpu_custom_call.1
= control target key start
LH: loop header
LB: loop body
LE: loop exit
PB: predicated region body
PF: predicated region fallthrough
CT: control target
= control target key end

     0   :  { %12 = vsyncpa [#allocation3], 0  ;;  %s506_s0 = inlined_call_operand.vmem [shape: f32[8,16], index: 0, kind: input, shape index: {}]   ;;  %s507_s1 = inlined_call_operand.hbm [shape: f32[16,32], index: 1, kind: input, shape index: {}]   ;;  %s508_s2 = inlined_call_operand.vmem [shape: f32[1,32], index: 2, kind: input, shape index: {}]   ;;  %s509_s3 = inlined_call_operand.vmem [shape: f32[32,32], index: 3, kind: input, shape index: {}]   ;;  %s510_s4 = inlined_call_operand.hbm [shape: f32[1,32], index: 4, kind: input, shape index: {}]   ;;  %s511_s5 = inlined_call_operand.vmem [shape: f32[32,3], index: 5, kind: input, shape index: {}]   ;;  %s512_s6 = inlined_call_operand.vmem [shape: f32[1,3], index: 6, kind: input, shape index: {}]   ;;  %s513_s7 = inlined_call_operand.vmem [shape: f32[8,3], index: 7, kind: output, shape index: {}]  }
   0x1   :  { %13 = vsyncpa [#allocation5], 0  ;;  %s413_s24 = smov [#allocation2]  }
   0x2   :  { %s21_s25 = sshll.u32 %s413_s24, 4  ;;  %s22_s25 = int_to_ptr.vmem [resolvable:$true] %s21_s25 }
   0x3   :  { %s377_s26 = scalar_lea.vmem %s22_s25, 256  ;;  %p382_p1 = scmp.lt.s32.totalorder %s22_s25, %s22_s25 }
   0x4   :  { %p378_p0 = scmp.ne.s32.totalorder %s22_s25, %s377_s26  ;;  %p383_p2 = scmp.lt.s32.totalorder %s377_s26, %s377_s26 }
   0x6   :  { %p384_p3 = por %p383_p2, %p382_p1 }
   0x8   :  { %p385_p4 = pnand %p384_p3, %p378_p0 }
   0xa   :  { %388 = shalt.err (!%p385_p4)
}
   0xb   :  { %s414_s27 = smov 128   ;;  %s415_s28 = smov 8  }
   0xc   :  { %27 = dma.hbm_to_vmem [thread:$0]  %s507_s1, 256, %s22_s25, [#allocation3], %s414_s27, %s414_s27, %s415_s28  }
   0xd   :  { %s416_s8 = smov [#allocation4]  }
   0xe   :  { %s38_s9 = sshll.u32 %s416_s8, 4  ;;  %s39_s9 = int_to_ptr.vmem [resolvable:$true] %s38_s9 }
   0xf   :  { %s397_s10 = scalar_lea.vmem %s39_s9, 16  ;;  %s401_s11 = scalar_lea.vmem %s39_s9, 32 }
  0x10   :  { %p398_p5 = scmp.ne.s32.totalorder %s39_s9, %s397_s10  ;;  %p402_p6 = scmp.lt.s32.totalorder %s39_s9, %s39_s9 }
  0x11   :  { %p403_p7 = scmp.lt.s32.totalorder %s401_s11, %s397_s10 }
  0x13   :  { %p404_p8 = por %p403_p7, %p402_p6 }
  0x15   :  { %p405_p9 = pnand %p404_p8, %p398_p5 }
  0x17   :  { %408 = shalt.err (!%p405_p9)
}
  0x18   :  { %41 = dma.hbm_to_vmem [thread:$0]  %s510_s4, 16, %s39_s9, [#allocation5]  }
  0x19   :  { %409 = dma.done.wait [#allocation3], 256  }
  0x1a   :  { %410 = vsyncadd [#allocation3], 4294967040 }
  0x1b   :  { %411 = dma.done.wait [#allocation5], 16  }
  0x1c   :  { %412 = vsyncadd [#allocation5], 4294967280  ;;  %v417_v0 = vmov 0.0   ;;  %vm418_vm0 = vmmov 0   ;;  %v54_v1 = vld [vmem:[#allocation2 + $0x8] sm:$0xff]  ;;  %v53_v2 = vld [vmem:[#allocation2] sm:$0xff] }
  0x1d   :  { %334 = vmatprep.subr.mxu0 %v417_v0  ;;  %338 = vmatprep.mubr.msk.f32.mxu0 %vm418_vm0, %v417_v0  ;;  %v52_v3 = vld [vmem:[%s506_s0] sm:$0xff]  ;;  %vm62_vm1 = vcmask 130048   ;;  %v140_v4 = vld [vmem:[%s509_s3 + $0x18] sm:$0xff]  ;;  %v139_v5 = vld [vmem:[%s509_s3 + $0x10] sm:$0xff]  ;;  %vm148_vm2 = vcmask 261120   ;;  %vm307_vm3 = vcmask 23552  }
  0x1e   :  { %341 = vmatprep.subr.mxu1 %v417_v0  ;;  %349 = vmatprep.mubr.msk.f32.mxu1 %vm418_vm0, %v417_v0  ;;  %v138_v6 = vld [vmem:[%s509_s3 + $0x8] sm:$0xff]  ;;  %v137_v7 = vld [vmem:[%s509_s3] sm:$0xff]  ;;  %v226_v8 = vld [vmem:[%s511_s5 + $0x18] sm:$0xff] }
  0x1f   :  { %335 = vmatpush3.msra.mxu0 %v54_v1  ;;  %342 = vmatpush3.msra.mxu1 %v140_v4  ;;  %v315_v9 = vld [vmem:[%s508_s2] ss:$0 sm:$0xff]  ;;  %v225_v14 = vld [vmem:[%s511_s5 + $0x10] sm:$0xff]  ;;  %v224_v15 = vld [vmem:[%s511_s5 + $0x8] sm:$0xff] }
  0x20   :  { %336 = vmatprep.subr.mxu0 %v417_v0  ;;  %343 = vmatprep.subr.mxu1 %v417_v0  ;;  %v223_v16 = vld [vmem:[%s511_s5] sm:$0xff]  ;;  %v317_v17 = vld [vmem:[#allocation4] ss:$0 sm:$0xff] }
  0x21   :  { %337 = vmatpush3.msra.mxu0 %v53_v2  ;;  %344 = vmatpush3.msra.mxu1 %v139_v5  ;;  %v319_v22 = vld [vmem:[%s512_s6] ss:$0 sm:$0xff] }
  0x22   :  { %339 = vmatmul.mubr.msk.f32.vlgmr.msra.gmra.mxu0 %vm62_vm1, %v52_v3  ;;  %352 = vmatprep.subr.mxu0 %v417_v0 }
  0x23   :  { %360 = vmatprep.mubr.msk.f32.mxu0 %vm418_vm0, %v417_v0  ;;  %345 = vmatprep.subr.mxu1 %v417_v0 }
  0x24   :  { %346 = vmatpush3.msra.mxu1 %v138_v6  ;;  %353 = vmatpush3.msra.mxu0 %v226_v8 }
  0x25   :  { %347 = vmatprep.subr.mxu1 %v417_v0  ;;  %354 = vmatprep.subr.mxu0 %v417_v0 }
  0x26   :  { %348 = vmatpush3.msra.mxu1 %v137_v7  ;;  %355 = vmatpush3.msra.mxu0 %v225_v14 }
  0x27   :  { %356 = vmatprep.subr.mxu0 %v417_v0 }
  0x28   :  { %357 = vmatpush3.msra.mxu0 %v224_v15 }
  0x29   :  { %358 = vmatprep.subr.mxu0 %v417_v0 }
  0x2a   :  { %359 = vmatpush3.msra.mxu0 %v223_v16 }
  0xe2   :  { %v132_v10 = vpop.f32.mrf.mxu0 }
  0xe3   :  { %v133_v11 = vadd.f32 %v315_v9, %v132_v10 }
  0xe4   :  { %v340_v12 = vpop.f32.mrf.mxu0 }
  0xe5   :  { %v136_v13 = vmax.f32 %v133_v11, 0.0 }
  0xe7   :  { %350 = vmatmul.mubr.msk.f32.vlgmr.msra.gmra.mxu1 %vm148_vm2, %v136_v13 }
 0x1a7   :  { %v218_v18 = vpop.f32.mrf.mxu1 }
 0x1a8   :  { %v219_v19 = vadd.f32 %v317_v17, %v218_v18 }
 0x1a9   :  { %v351_v20 = vpop.f32.mrf.mxu1 }
 0x1aa   :  { %v222_v21 = vmax.f32 %v219_v19, 0.0 }
 0x1ac   :  { %361 = vmatmul.mubr.msk.f32.vlgmr.msra.gmra.mxu0 %vm148_vm2, %v222_v21 }
 0x26c   :  { %v303_v23 = vpop.f32.mrf.mxu0 }
 0x26d   :  { %v304_v24 = vadd.f32 %v319_v22, %v303_v23 }
 0x26e   :  { %v362_v25 = vpop.f32.mrf.mxu0 }
 0x26f   :  { %308 = vst.msk [vmem:[%s513_s7] sm:$0xff] %vm307_vm3, %v304_v24 }
 0x270   :  { %313 = vsyncpa [#allocation3], 1 }
 0x271   :  { %314 = vsyncpa [#allocation5], 1 }

</bundles_post_ra>
